<compile_context>
chip_gen: v5e
topology: v5e:2x2
jax: 0.10.0
libtpu: 0.0.40
codegen_flags: <defaults>
</compile_context>

<pallas_src>
import jax
import jax.numpy as jnp
import numpy as np
from jax.experimental import pallas as pl
from jax.experimental.pallas import tpu as pltpu

HIDDEN = 256          # hidden width of the attention MLP (Conv1d(dim, 256, k=1))
BN_EPS = 1e-5         # PyTorch BatchNorm1d default eps


def asp_kernel(x_ref, w1t_ref, w2t_ref, aux_ref, out_ref):
    """Processes TB batch elements per grid step.

    x_ref:   (TB, N, N)   original layout, x[b, d, f]  (d = length, f = channel)
    w1t_ref: (N, 256)     Conv1d(dim, 256, k=1) weight, transposed (compute dtype)
    w2t_ref: (256, N)     Conv1d(256, dim, k=1) weight, transposed (compute dtype)
    aux_ref: (3, 256)     row 0 = b1, row 1 = BN scale, row 2 = BN shift (f32)
    out_ref: (TB, 2, N)   row 0 = mu, row 1 = sigma   (lane-dense)
    """
    TB, N, _ = x_ref.shape

    xb = x_ref[...]                                    # (TB, N, N) compute dtype
    x2 = xb.reshape(TB * N, N)                         # batches stacked on sublanes

    # Conv1d(dim, 256, k=1):  h[d, o] = sum_f x[d, f] * W1[o, f] + b1[o]
    h = jnp.dot(x2, w1t_ref[...],
                preferred_element_type=jnp.float32)    # (TB*N, 256) f32 acc
    h = jnp.maximum(h + aux_ref[0:1, :], 0.0)          # + b1, ReLU
    h = h * aux_ref[1:2, :] + aux_ref[2:3, :]          # BatchNorm1d (eval, folded)
    h = jnp.tanh(h.astype(w2t_ref.dtype))              # Tanh in compute dtype (bf16 EUP)

    # Conv1d(256, dim, k=1) WITHOUT the bias b2: b2[p] is constant along the
    # softmax (length) axis d, so it cancels exactly in softmax(s, axis=d).
    s = jnp.dot(h, w2t_ref[...],
                preferred_element_type=jnp.float32)    # (TB*N, N) f32 acc
    s3 = s.reshape(TB, N, N)                           # [b, d, p]

    # Un-normalized softmax over the length axis d (PyTorch dim=2) == axis 1.
    s_max = jnp.max(s3, axis=1, keepdims=True)         # (TB, 1, N)
    e = jnp.exp(s3 - s_max)                            # (TB, N, N) f32
    denom = jnp.sum(e, axis=1, keepdims=True)          # (TB, 1, N)

    # Attentive statistics with deferred normalization; the upconvert of xb to
    # f32 is inlined into the products (no standalone f32 copy of x).
    xe = e * xb                                        # (TB, N, N) f32
    num_mu = jnp.sum(xe, axis=1, keepdims=True)        # (TB, 1, N)
    num_msq = jnp.sum(xe * xb, axis=1, keepdims=True)  # (TB, 1, N)

    inv = pl.reciprocal(denom, approx=True)            # EUP reciprocal, tiny shape
    mu = num_mu * inv
    msq = num_msq * inv
    sg = jnp.sqrt(jnp.maximum(msq - mu * mu, 1e-4))

    out_ref[:, 0:1, :] = mu
    out_ref[:, 1:2, :] = sg


def asp_forward(x, params, *, block_b=None, compute_dtype=jnp.bfloat16):
    """x: (B, dim, frames) — mirrors the PyTorch forward (eval-mode BatchNorm).

    Statistics are always accumulated in f32; x / weights travel in
    compute_dtype (bf16 by default, halving the only recurring HBM stream).
    """
    B, dim, frames = x.shape
    assert frames == dim, "reference module requires frames == dim"
    N = dim
    hidden = params["w1"].shape[0]
    assert params["w1"].shape == (hidden, N)
    assert params["w2"].shape == (N, hidden)

    itemsize = np.dtype(compute_dtype).itemsize

    # --- Batch tile size -----------------------------------------------------
    # Fill the MXU M dimension (aim for TB*N >= 512 rows ~ 2x the 256-row
    # systolic M of v6e/v7x) while keeping the per-step footprint (x block +
    # f32 temporaries) around <= 24 MiB so double-buffering fits v7x's 64 MiB
    # VMEM and v5e's smaller scoped budget.
    if block_b is None:
        per_batch = N * N * (2 * itemsize + 3 * 4) + N * hidden * (4 + itemsize)
        block_b = max(1, min(max(1, 512 // N), (24 << 20) // max(per_batch, 1)))
    TB = max(1, min(block_b, B))

    B_pad = ((B + TB - 1) // TB) * TB
    x = x.astype(compute_dtype)
    if B_pad != B:
        # Padded rows are all-zero -> uniform softmax, finite stats, discarded.
        x = jnp.pad(x, ((0, B_pad - B), (0, 0), (0, 0)))

    # Pre-transpose weights once so the kernel never transposes the big input.
    w1t = params["w1"].T.astype(compute_dtype)         # (N, 256)
    w2t = params["w2"].T.astype(compute_dtype)         # (256, N)

    # Fold BatchNorm (eval mode) into a per-channel affine; pack b1 / scale /
    # shift into one (3, 256) side array (single small DMA).  The Conv1d(256,
    # dim) bias b2 is dropped: constant along the softmax axis => cancels.
    inv_std = 1.0 / jnp.sqrt(params["running_var"] + BN_EPS)
    scale = params["gamma"] * inv_std
    shift = params["beta"] - params["running_mean"] * scale
    aux = jnp.stack([params["b1"], scale, shift], axis=0).astype(jnp.float32)

    # --- Explicit scoped-VMEM budget (v5e default is only 16 MiB) ------------
    x_block = TB * N * N * itemsize
    weights = 2 * N * hidden * itemsize + 3 * hidden * 4
    temps = TB * N * (hidden * 4 + 2 * N * 4)           # h + e + x*e (f32)
    outs = TB * 2 * N * 4
    vmem_limit = int(min(max(2 * (2 * (x_block + weights + outs) + temps),
                             32 << 20), 64 << 20))      # 64 MiB cap is v7x-safe

    out = pl.pallas_call(
        asp_kernel,
        out_shape=jax.ShapeDtypeStruct((B_pad, 2, N), jnp.float32),
        grid=(B_pad // TB,),
        in_specs=[
            pl.BlockSpec((TB, N, N), lambda i: (i, 0, 0)),
            pl.BlockSpec((N, hidden), lambda i: (0, 0)),
            pl.BlockSpec((hidden, N), lambda i: (0, 0)),
            pl.BlockSpec((3, hidden), lambda i: (0, 0)),
        ],
        out_specs=pl.BlockSpec((TB, 2, N), lambda i: (i, 0, 0)),
        compiler_params=pltpu.CompilerParams(
            dimension_semantics=("parallel",),           # batch axis -> 2 TCs on v7x
            vmem_limit_bytes=vmem_limit),
    )(x, w1t, w2t, aux)

    # (B, 2, N): row 0 = mu, row 1 = sigma  ->  reshape gives [mu..., sg...],
    # matching torch.cat((mu, sg), dim=1).  No output transpose needed.
    return out[:B].reshape(B, 2 * N)


def asp_reference(x, params):
    """Pure-JAX f32 reference of the PyTorch forward (eval-mode BatchNorm)."""
    xp = jnp.transpose(x, (0, 2, 1)).astype(jnp.float32)
    h = jnp.einsum("of,bfd->bod", params["w1"], xp,
                   preferred_element_type=jnp.float32) + params["b1"][None, :, None]
    h = jnp.maximum(h, 0.0)
    inv_std = 1.0 / jnp.sqrt(params["running_var"] + BN_EPS)
    scale = params["gamma"] * inv_std
    shift = params["beta"] - params["running_mean"] * scale
    h = h * scale[None, :, None] + shift[None, :, None]
    h = jnp.tanh(h)
    s = jnp.einsum("po,bod->bpd", params["w2"], h,
                   preferred_element_type=jnp.float32) + params["b2"][None, :, None]
    w = jax.nn.softmax(s, axis=2)
    mu = jnp.sum(xp * w, axis=2)
    sg = jnp.sqrt(jnp.maximum(jnp.sum(xp * xp * w, axis=2) - mu * mu, 1e-4))
    return jnp.concatenate([mu, sg], axis=1)


if __name__ == "__main__":
    B, DIM, FRAMES = 6, 16, 16   # frames == dim required by the reference module
    key = jax.random.PRNGKey(0)
    ks = jax.random.split(key, 10)

    x = jax.random.normal(ks[0], (B, DIM, FRAMES), jnp.float32)
    params = {
        "w1": 0.1 * jax.random.normal(ks[1], (HIDDEN, DIM), jnp.float32),
        "b1": 0.1 * jax.random.normal(ks[2], (HIDDEN,), jnp.float32),
        "gamma": 1.0 + 0.1 * jax.random.normal(ks[3], (HIDDEN,), jnp.float32),
        "beta": 0.1 * jax.random.normal(ks[4], (HIDDEN,), jnp.float32),
        "running_mean": 0.1 * jax.random.normal(ks[7], (HIDDEN,), jnp.float32),
        "running_var": 1.0 + 0.1 * jnp.abs(
            jax.random.normal(ks[8], (HIDDEN,), jnp.float32)),
        "w2": 0.1 * jax.random.normal(ks[5], (DIM, HIDDEN), jnp.float32),
        "b2": 0.1 * jax.random.normal(ks[6], (DIM,), jnp.float32),
    }

    ref = jax.block_until_ready(asp_reference(x, params))

    # block_b=4 with B=6 exercises the batch-padding path (B padded to 8, 2 steps).
    out = jax.block_until_ready(asp_forward(x, params, block_b=4))
    assert out.shape == (B, 2 * DIM), out.shape
    err = float(jnp.max(jnp.abs(out - ref)))
    # Tolerance covers bf16 input/weights (f32 accumulation), bf16 tanh, and
    # the approx softmax reciprocal; structural errors would be O(1).
    assert err < 5e-2, f"max abs err {err}"

    # Auto block_b path (TB capped at B -> single grid step).
    out2 = jax.block_until_ready(asp_forward(x, params))
    err2 = float(jnp.max(jnp.abs(out2 - ref)))
    assert err2 < 5e-2, f"max abs err {err2}"

    print("KERNEL_OK")
</pallas_src>

<mosaic_0001>
module attributes {stable_mosaic.version = 11 : i64} {
  func.func @asp_kernel(%arg0: i32, %arg1: memref<4x16x16xbf16, #tpu.memory_space<vmem>>, %arg2: memref<16x256xbf16, #tpu.memory_space<vmem>>, %arg3: memref<256x16xbf16, #tpu.memory_space<vmem>>, %arg4: memref<3x256xf32, #tpu.memory_space<vmem>>, %arg5: memref<4x2x16xf32, #tpu.memory_space<vmem>>) attributes {dimension_semantics = [#tpu.dimension_semantics<parallel>], iteration_bounds = array<i64: 2>, scalar_prefetch = 0 : i64, scratch_operands = 0 : i64, tpu.core_type = #tpu.core_type<tc>, window_params = [{transform_indices = @transform_0, window_bounds = array<i64: 4, 16, 16>}, {pipeline_mode = #tpu.pipeline_mode<synchronous>, transform_indices = @transform_1, window_bounds = array<i64: 16, 256>}, {pipeline_mode = #tpu.pipeline_mode<synchronous>, transform_indices = @transform_2, window_bounds = array<i64: 256, 16>}, {pipeline_mode = #tpu.pipeline_mode<synchronous>, transform_indices = @transform_3, window_bounds = array<i64: 3, 256>}, {transform_indices = @transform_4, window_bounds = array<i64: 4, 2, 16>}]} {
    %c0 = arith.constant 0 : index
    %c0_0 = arith.constant 0 : index
    %c0_1 = arith.constant 0 : index
    %0 = vector.load %arg1[%c0, %c0_0, %c0_1] : memref<4x16x16xbf16, #tpu.memory_space<vmem>>, vector<4x16x16xbf16>
    %1 = vector.shape_cast %0 : vector<4x16x16xbf16> to vector<64x16xbf16>
    %c0_2 = arith.constant 0 : index
    %c0_3 = arith.constant 0 : index
    %2 = vector.load %arg2[%c0_2, %c0_3] : memref<16x256xbf16, #tpu.memory_space<vmem>>, vector<16x256xbf16>
    %cst = arith.constant dense<0.000000e+00> : vector<64x256xf32>
    %3 = tpu.matmul %1, %2, %cst {dimension_numbers = #tpu.dot_dimension_numbers<[1], [0], [0], [1], [0, 0, 1, 1], [], []>} : vector<64x16xbf16>, vector<16x256xbf16>, vector<64x256xf32> -> vector<64x256xf32>
    %c0_4 = arith.constant 0 : index
    %c0_5 = arith.constant 0 : index
    %4 = vector.load %arg4[%c0_4, %c0_5] : memref<3x256xf32, #tpu.memory_space<vmem>>, vector<1x256xf32>
    %5 = vector.broadcast %4 : vector<1x256xf32> to vector<64x256xf32>
    %6 = arith.addf %3, %5 : vector<64x256xf32>
    %cst_6 = arith.constant 0.000000e+00 : f32
    %7 = vector.broadcast %cst_6 : f32 to vector<64x256xf32>
    %8 = arith.maximumf %6, %7 : vector<64x256xf32>
    %c1 = arith.constant 1 : index
    %c0_7 = arith.constant 0 : index
    %9 = vector.load %arg4[%c1, %c0_7] : memref<3x256xf32, #tpu.memory_space<vmem>>, vector<1x256xf32>
    %10 = vector.broadcast %9 : vector<1x256xf32> to vector<64x256xf32>
    %11 = arith.mulf %8, %10 : vector<64x256xf32>
    %c2 = arith.constant 2 : index
    %c0_8 = arith.constant 0 : index
    %12 = vector.load %arg4[%c2, %c0_8] : memref<3x256xf32, #tpu.memory_space<vmem>>, vector<1x256xf32>
    %13 = vector.broadcast %12 : vector<1x256xf32> to vector<64x256xf32>
    %14 = arith.addf %11, %13 : vector<64x256xf32>
    %15 = arith.truncf %14 : vector<64x256xf32> to vector<64x256xbf16>
    %16 = math.tanh %15 : vector<64x256xbf16>
    %c0_9 = arith.constant 0 : index
    %c0_10 = arith.constant 0 : index
    %17 = vector.load %arg3[%c0_9, %c0_10] : memref<256x16xbf16, #tpu.memory_space<vmem>>, vector<256x16xbf16>
    %cst_11 = arith.constant dense<0.000000e+00> : vector<64x16xf32>
    %18 = tpu.matmul %16, %17, %cst_11 {dimension_numbers = #tpu.dot_dimension_numbers<[1], [0], [0], [1], [0, 0, 1, 1], [], []>} : vector<64x256xbf16>, vector<256x16xbf16>, vector<64x16xf32> -> vector<64x16xf32>
    %19 = vector.shape_cast %18 : vector<64x16xf32> to vector<4x16x16xf32>
    %cst_12 = arith.constant dense<0xFF800000> : vector<4x16xf32>
    %20 = vector.multi_reduction <maximumf>, %19, %cst_12 [1] : vector<4x16x16xf32> to vector<4x16xf32>
    %21 = vector.shape_cast %20 : vector<4x16xf32> to vector<4x1x16xf32>
    %22 = vector.broadcast %21 : vector<4x1x16xf32> to vector<4x16x16xf32>
    %23 = arith.subf %19, %22 : vector<4x16x16xf32>
    %24 = math.exp %23 : vector<4x16x16xf32>
    %cst_13 = arith.constant dense<0.000000e+00> : vector<4x16xf32>
    %25 = vector.multi_reduction <add>, %24, %cst_13 [1] : vector<4x16x16xf32> to vector<4x16xf32>
    %26 = vector.shape_cast %25 : vector<4x16xf32> to vector<4x1x16xf32>
    %27 = arith.extf %0 : vector<4x16x16xbf16> to vector<4x16x16xf32>
    %28 = arith.mulf %24, %27 : vector<4x16x16xf32>
    %cst_14 = arith.constant dense<0.000000e+00> : vector<4x16xf32>
    %29 = vector.multi_reduction <add>, %28, %cst_14 [1] : vector<4x16x16xf32> to vector<4x16xf32>
    %30 = vector.shape_cast %29 : vector<4x16xf32> to vector<4x1x16xf32>
    %31 = arith.extf %0 : vector<4x16x16xbf16> to vector<4x16x16xf32>
    %32 = arith.mulf %28, %31 : vector<4x16x16xf32>
    %cst_15 = arith.constant dense<0.000000e+00> : vector<4x16xf32>
    %33 = vector.multi_reduction <add>, %32, %cst_15 [1] : vector<4x16x16xf32> to vector<4x16xf32>
    %34 = vector.shape_cast %33 : vector<4x16xf32> to vector<4x1x16xf32>
    %35 = tpu.reciprocal %26 {approx = true} : vector<4x1x16xf32> -> vector<4x1x16xf32>
    %36 = arith.mulf %30, %35 : vector<4x1x16xf32>
    %37 = arith.mulf %34, %35 : vector<4x1x16xf32>
    %38 = arith.mulf %36, %36 : vector<4x1x16xf32>
    %39 = arith.subf %37, %38 : vector<4x1x16xf32>
    %cst_16 = arith.constant 9.99999974E-5 : f32
    %40 = vector.broadcast %cst_16 : f32 to vector<4x1x16xf32>
    %41 = arith.maximumf %39, %40 : vector<4x1x16xf32>
    %42 = math.sqrt %41 : vector<4x1x16xf32>
    %c0_17 = arith.constant 0 : index
    %c0_18 = arith.constant 0 : index
    %c0_19 = arith.constant 0 : index
    %43 = vector.load %arg5[%c0_17, %c0_18, %c0_19] : memref<4x2x16xf32, #tpu.memory_space<vmem>>, vector<4x1x16xf32>
    tpu.vector_store %arg5[%c0_17, %c0_18, %c0_19], %36 {strides = array<i32>} : memref<4x2x16xf32, #tpu.memory_space<vmem>>, vector<4x1x16xf32>,
    %c0_20 = arith.constant 0 : index
    %c1_21 = arith.constant 1 : index
    %c0_22 = arith.constant 0 : index
    %44 = vector.load %arg5[%c0_20, %c1_21, %c0_22] : memref<4x2x16xf32, #tpu.memory_space<vmem>>, vector<4x1x16xf32>
    tpu.vector_store %arg5[%c0_20, %c1_21, %c0_22], %42 {strides = array<i32>} : memref<4x2x16xf32, #tpu.memory_space<vmem>>, vector<4x1x16xf32>,
    return
  }
  func.func @transform_0(%arg0: i32) -> (i32, i32, i32) {
    %c0_i32 = arith.constant 0 : i32
    %c0_i32_0 = arith.constant 0 : i32
    %c0_i32_1 = arith.constant 0 : i32
    return %arg0, %c0_i32, %c0_i32_0 : i32, i32, i32
  }
  func.func @transform_1(%arg0: i32) -> (i32, i32) {
    %c0_i32 = arith.constant 0 : i32
    %c0_i32_0 = arith.constant 0 : i32
    %c0_i32_1 = arith.constant 0 : i32
    return %c0_i32, %c0_i32_0 : i32, i32
  }
  func.func @transform_2(%arg0: i32) -> (i32, i32) {
    %c0_i32 = arith.constant 0 : i32
    %c0_i32_0 = arith.constant 0 : i32
    %c0_i32_1 = arith.constant 0 : i32
    return %c0_i32, %c0_i32_0 : i32, i32
  }
  func.func @transform_3(%arg0: i32) -> (i32, i32) {
    %c0_i32 = arith.constant 0 : i32
    %c0_i32_0 = arith.constant 0 : i32
    %c0_i32_1 = arith.constant 0 : i32
    return %c0_i32, %c0_i32_0 : i32, i32
  }
  func.func @transform_4(%arg0: i32) -> (i32, i32, i32) {
    %c0_i32 = arith.constant 0 : i32
    %c0_i32_0 = arith.constant 0 : i32
    %c0_i32_1 = arith.constant 0 : i32
    return %arg0, %c0_i32, %c0_i32_0 : i32, i32, i32
  }
}

</mosaic_0001>

<bundles_post_ra>
// kernel: tpu_custom_call.1
= control target key start
LH: loop header
LB: loop body
LE: loop exit
PB: predicated region body
PF: predicated region fallthrough
CT: control target
= control target key end

     0   :  { %9 = vsyncpa [#allocation3], 0  ;;  %s1618_s0 = inlined_call_operand.vmem [shape: bf16[8,16,16], index: 0, kind: input, shape index: {}]   ;;  %s1619_s1 = inlined_call_operand.vmem [shape: bf16[16,256], index: 1, kind: input, shape index: {}]   ;;  %s1620_s2 = inlined_call_operand.vmem [shape: bf16[256,16], index: 2, kind: input, shape index: {}]   ;;  %s1621_s3 = inlined_call_operand.vmem [shape: f32[3,256], index: 3, kind: input, shape index: {}]   ;;  %s1622_s4 = inlined_call_operand.hbm [shape: f32[8,2,16], index: 4, kind: output, shape index: {}]  }
   0x1   :  { %11 = vsyncpa [#allocation3 + $0x1], 0  ;;  %s1298_s15 = smov 0   ;;  %s1300_s16 = smov 0  }
   0x2   :  { %s1302_s17 = smov 0   ;;  %s1304_s18 = smov 0  }
   0x3 LB: > { %s1319_s19 = sadd.s32 4294967295, %s1269_s18   ;;  %s967_s20 = sadd.s32 4294967294, %s1269_s18   ;;  %s1269_s18 = sphi %s1304_s18, %s1628_s18   ;;  %s1265_s17 = sphi %s1302_s17, %s1627_s17   ;;  %s1261_s16 = sphi %s1300_s16, %s1626_s16   ;;  %s1257_s15 = sphi %s1298_s15, %s1625_s15  }
   0x4   : > { %s1323_s21 = sadd.s32 1, %s1269_s18   ;;  %s113_s22 = sadd.s32 1, %s1265_s17 }
   0x5   : > { %s110_s23 = ssub.s32 %s1269_s18, %s1323_s21  ;;  %p123_p0 = scmp.ne.s32.totalorder %s1265_s17, %s1261_s16 }
   0x6   : > { %p111_p1 = scmp.eq.s32.totalorder %s110_s23, 0  ;;  %p124_p2 = scmp.eq.s32.totalorder %s1319_s19, 1 }
   0x7   : > { %p129_p3 = scmp.ne.s32.totalorder %s1261_s16, %s1257_s15  ;;  %p130_p4 = scmp.eq.s32.totalorder %s967_s20, 1 }
   0x8   : > { %s1334_s24 = scalar_select %p111_p1, %s1265_s17, %s113_s22  }
   0x9   : > { %p1336_p5 = por %p124_p2, %p123_p0  ;;  %p1340_p6 = por %p130_p4, %p129_p3 }
   0xa   : > { %p970_p7 = scmp.ge.s32.totalorder %s1269_s18, 1  ;;  %p167_p8 = scmp.lt.s32.totalorder %s1269_s18, 3 }
   0xc   : > { %p168_p9 = pnand %p970_p7, %p167_p8 }
   0xd   : > { %s972_s9 = sshll.u32 (!%p168_p9), %s1319_s19, 2  ;;  %s191_s29 = sand.u32 (!%p168_p9), 1, %s1261_s16  }
   0xe   : > { %171 = sbr.rel (%p168_p9) target bundleno = 457 (0x1c9), region = 36  ;;  %p195_p10 = scmp.lt.s32.totalorder (!%p168_p9), %s972_s9, 7 }
   0xf   : > { %s971_s30 = sshll.u32 (!%p168_p9), %s191_s29, 3  ;;  %s1227_s22 = scalar_lea.hbm (!%p168_p9), %s1622_s4, 16 }
  0x10   : > { %s1532_s5 = scalar_lea.vmem (!%p168_p9), [#allocation2], %s971_s30 }
  0x13   : > { %v993_v0 = vld [vmem:[%s1619_s1] sm:$0xf]  ;;  %v1084_v1 = vld [vmem:[%s1619_s1 + $0x4] sm:$0xf0]  ;;  %v1083_v2 = vld [vmem:[%s1619_s1 + $0x4] sm:$0xf] }
  0x14   : > { %v994_v3 = vor.u32 %v1084_v1, %v993_v0  ;;  %v995_v4 = vld [vmem:[%s1619_s1 + $0x8] sm:$0xf0]  ;;  %s1630_s9 = smov (!%p195_p10, %s972_s9), 7  ;;  %vm249_vm0 = vcmask 130048   ;;  %v1092_v8 = vld [vmem:[%s1620_s2 + $0x38] sm:$0xff]  ;;  %v1091_v12 = vld [vmem:[%s1620_s2 + $0x30] sm:$0xff] }
  0x15   : > { %v998_v5 = vor.u32 %v1083_v2, %v995_v4  ;;  %s1078_s10 = sshll.u32 %s1630_s9, 3  ;;  %v1100_v9 = vld [vmem:[%s1620_s2 + $0x78] sm:$0xff]  ;;  %558 = vmatpush.bf16.msra.mxu2 %v1092_v8  ;;  %v1099_v13 = vld [vmem:[%s1620_s2 + $0x70] sm:$0xff]  ;;  %v1090_v14 = vld [vmem:[%s1620_s2 + $0x28] sm:$0xff]  ;;  %vm880_vm1 = vcmask 122880   ;;  %s902_s9 = sshll.u32 %s1532_s5, 4  ;;  %s903_s9 = int_to_ptr.vmem [resolvable:$true] %s902_s9 }
  0x16   : > { %269 = vmatpush.bf16.msra.mxu0 %v994_v3  ;;  %s1362_s13 = scalar_lea.vmem %s1618_s0, %s1078_s10  ;;  %587 = vmatpush.bf16.msra.mxu3 %v1100_v9  ;;  %v1098_v15 = vld [vmem:[%s1620_s2 + $0x68] sm:$0xff]  ;;  %v1089_v16 = vld [vmem:[%s1620_s2 + $0x20] sm:$0xff]  ;;  %v1088_v18 = vld [vmem:[%s1620_s2 + $0x18] sm:$0xff] }
  0x17   : > { %298 = vmatpush.bf16.msra.mxu1 %v998_v5  ;;  %v1079_v6 = vld [vmem:[%s1362_s13] sm:$0xff]  ;;  %v1080_v7 = vld [vmem:[%s1362_s13 + $0x8] sm:$0xff]  ;;  %v1081_v10 = vld [vmem:[%s1362_s13 + $0x10] sm:$0xff] }
  0x18   : > { %v1082_v11 = vld [vmem:[%s1362_s13 + $0x18] sm:$0xff]  ;;  %v1097_v17 = vld [vmem:[%s1620_s2 + $0x60] sm:$0xff]  ;;  %v1087_v20 = vld [vmem:[%s1620_s2 + $0x10] sm:$0xff] }
  0x19   : > { %999 = vmatmul.msk.bf16.vlgmr.msra.gmra.mxu0 %vm249_vm0, %v1079_v6  ;;  %559 = vmatpush.bf16.msra.mxu2 %v1091_v12  ;;  %v1096_v19 = vld [vmem:[%s1620_s2 + $0x58] sm:$0xff]  ;;  %v1095_v21 = vld [vmem:[%s1620_s2 + $0x50] sm:$0xff]  ;;  %v1086_v22 = vld [vmem:[%s1620_s2 + $0x8] sm:$0xff] }
  0x1a   : > { %1003 = vmatmul.msk.bf16.vlgmr.msra.gmra.mxu1 %vm249_vm0, %v1079_v6  ;;  %588 = vmatpush.bf16.msra.mxu3 %v1099_v13  ;;  %v1094_v23 = vld [vmem:[%s1620_s2 + $0x48] sm:$0xff]  ;;  %v1085_v24 = vld [vmem:[%s1620_s2] sm:$0xff] }
  0x1b   : > { %v1093_v25 = vld [vmem:[%s1620_s2 + $0x40] sm:$0xff] }
  0x1c   : > { %v213_v26 = vld [vmem:[%s1621_s3] ss:$4 sm:$0x3]  ;;  %v1007_v32 = vld [vmem:[%s1621_s3 + $0x1] ss:$4 sm:$0x3] }
  0x1d   : > { %560 = vmatpush.bf16.msra.mxu2 %v1090_v14  ;;  %v1427_v27 = vperm.slane %v213_v26, 0  ;;  %v1429_v28 = vperm.slane %v213_v26, 1  ;;  %v1436_v34 = vperm.slane %v1007_v32, 0  ;;  %v1008_v36 = vld [vmem:[%s1621_s3 + $0x2] ss:$4 sm:$0x3] }
  0x1e   : > { %589 = vmatpush.bf16.msra.mxu3 %v1098_v15  ;;  %v1441_v38 = vperm.slane %v1007_v32, 1  ;;  %v1445_v43 = vperm.slane %v1008_v36, 0  ;;  %v1447_v44 = vperm.slane %v1008_v36, 1 }
  0x21   : > { %561 = vmatpush.bf16.msra.mxu2 %v1089_v16 }
  0x22   : > { %590 = vmatpush.bf16.msra.mxu3 %v1097_v17 }
  0x25   : > { %562 = vmatpush.bf16.msra.mxu2 %v1088_v18 }
  0x26   : > { %591 = vmatpush.bf16.msra.mxu3 %v1096_v19 }
  0x29   : > { %1000 = vmatmul.msk.bf16.gmra.mxu0 %vm249_vm0, %v1080_v7  ;;  %563 = vmatpush.bf16.msra.mxu2 %v1087_v20 }
  0x2a   : > { %1004 = vmatmul.msk.bf16.gmra.mxu1 %vm249_vm0, %v1080_v7  ;;  %592 = vmatpush.bf16.msra.mxu3 %v1095_v21 }
  0x2d   : > { %564 = vmatpush.bf16.msra.mxu2 %v1086_v22 }
  0x2e   : > { %593 = vmatpush.bf16.msra.mxu3 %v1094_v23 }
  0x31   : > { %565 = vmatpush.bf16.msra.mxu2 %v1085_v24 }
  0x32   : > { %594 = vmatpush.bf16.msra.mxu3 %v1093_v25 }
  0x39   : > { %1001 = vmatmul.msk.bf16.gmra.mxu0 %vm249_vm0, %v1081_v10 }
  0x3a   : > { %1005 = vmatmul.msk.bf16.gmra.mxu1 %vm249_vm0, %v1081_v10 }
  0x49   : > { %1002 = vmatmul.msk.bf16.gmra.mxu0 %vm249_vm0, %v1082_v11 }
  0x4a   : > { %1006 = vmatmul.msk.bf16.gmra.mxu1 %vm249_vm0, %v1082_v11 }
  0x96   : > { %v271_v29 = vpop.f32.mrf.mxu0 }
  0x97   : > { %v300_v30 = vpop.f32.mrf.mxu1  ;;  %v272_v31 = vadd.f32 %v271_v29, %v1427_v27 }
  0x98   : > { %v301_v33 = vadd.f32 %v300_v30, %v1429_v28 }
  0x99   : > { %v320_v35 = vmax.f32 %v272_v31, 0.0 }
  0x9a   : > { %v321_v37 = vmax.f32 %v301_v33, 0.0 }
  0x9b   : > { %v343_v45 = vmul.f32 %v1436_v34, %v320_v35 }
  0x9c   : > { %v344_v46 = vmul.f32 %v1441_v38, %v321_v37 }
  0x9d   : > { %v366_v51 = vadd.f32 %v1445_v43, %v343_v45 }
  0x9e   : > { %v273_v39 = vpop.f32.mrf.mxu0  ;;  %v367_v52 = vadd.f32 %v1447_v44, %v344_v46 }
  0x9f   : > { %v302_v40 = vpop.f32.mrf.mxu1  ;;  %v274_v41 = vadd.f32 %v273_v39, %v1427_v27 }
  0xa0   : > { %v303_v42 = vadd.f32 %v302_v40, %v1429_v28 }
  0xa1   : > { %v322_v47 = vmax.f32 %v274_v41, 0.0 }
  0xa2   : > { %v323_v48 = vmax.f32 %v303_v42, 0.0 }
  0xa3   : > { %v345_v49 = vmul.f32 %v1436_v34, %v322_v47 }
  0xa4   : > { %v346_v50 = vmul.f32 %v1441_v38, %v323_v48 }
  0xa5   : > { %v368_v53 = vadd.f32 %v1445_v43, %v345_v49 }
  0xa6   : > { %v369_v54 = vadd.f32 %v1447_v44, %v346_v50  ;;  %v276_v55 = vpop.f32.mrf.mxu0 }
  0xa7   : > { %v305_v56 = vpop.f32.mrf.mxu1  ;;  %v382_v57 = vpack.c.bf16 %v368_v53, %v366_v51  ;;  %v277_v59 = vadd.f32 %v276_v55, %v1427_v27 }
  0xa8   : > { %v383_v58 = vpack.c.bf16 %v369_v54, %v367_v52  ;;  %v306_v60 = vadd.f32 %v305_v56, %v1429_v28 }
  0xa9   : > { %v390_v61 = vunpack.c.l.bf16 %v382_v57  ;;  %v392_v62 = vunpack.c.h.bf16 %v382_v57  ;;  %v324_v1 = vmax.f32 %v277_v59, 0.0 }
  0xaa   : > { %v391_v63 = vunpack.c.l.bf16 %v383_v58  ;;  %v393_v0 = vunpack.c.h.bf16 %v383_v58  ;;  %v325_v2 = vmax.f32 %v306_v60, 0.0 }
  0xab   : > { %1143 = vtanh.f32 %v390_v61  ;;  %v347_v7 = vmul.f32 %v1436_v34, %v324_v1 }
  0xac   : > { %1145 = vtanh.f32 %v392_v62  ;;  %v348_v9 = vmul.f32 %v1441_v38, %v325_v2 }
  0xad   : > { %1147 = vtanh.f32 %v391_v63  ;;  %v370_v18 = vadd.f32 %v1445_v43, %v347_v7 }
  0xae   : > { %v278_v3 = vpop.f32.mrf.mxu0  ;;  %1149 = vtanh.f32 %v393_v0  ;;  %v371_v19 = vadd.f32 %v1447_v44, %v348_v9 }
  0xaf   : > { %v307_v4 = vpop.f32.mrf.mxu1  ;;  %v279_v5 = vadd.f32 %v278_v3, %v1427_v27 }
  0xb0   : > { %v308_v6 = vadd.f32 %v307_v4, %v1429_v28 }
  0xb1   : > { %v1144_v8 = vpop.eup %1143  ;;  %v326_v10 = vmax.f32 %v279_v5, 0.0 }
  0xb2   : > { %v327_v11 = vmax.f32 %v308_v6, 0.0  ;;  %v1146_v12 = vpop.eup %1145 }
  0xb3   : > { %v1148_v13 = vpop.eup %1147  ;;  %v349_v14 = vmul.f32 %v1436_v34, %v326_v10  ;;  %v422_v16 = vpack.c.bf16 %v1146_v12, %v1144_v8 }
  0xb4   : > { %v350_v15 = vmul.f32 %v1441_v38, %v327_v11  ;;  %v1150_v17 = vpop.eup %1149 }
  0xb5   : > { %v372_v20 = vadd.f32 %v1445_v43, %v349_v14  ;;  %566 = vmatmul.bf16.vlgmr.msra.gmra.mxu2 %v422_v16  ;;  %v423_v22 = vpack.c.bf16 %v1150_v17, %v1148_v13 }
  0xb6   : > { %v373_v21 = vadd.f32 %v1447_v44, %v350_v15  ;;  %v281_v23 = vpop.f32.mrf.mxu0 }
  0xb7   : > { %v310_v24 = vpop.f32.mrf.mxu1  ;;  %v384_v25 = vpack.c.bf16 %v372_v20, %v370_v18  ;;  %595 = vmatmul.bf16.vlgmr.msra.gmra.mxu3 %v423_v22  ;;  %v282_v29 = vadd.f32 %v281_v23, %v1427_v27 }
  0xb8   : > { %v385_v26 = vpack.c.bf16 %v373_v21, %v371_v19  ;;  %v311_v30 = vadd.f32 %v310_v24, %v1429_v28 }
  0xb9   : > { %v394_v31 = vunpack.c.l.bf16 %v384_v25  ;;  %v396_v32 = vunpack.c.h.bf16 %v384_v25  ;;  %v328_v36 = vmax.f32 %v282_v29, 0.0 }
  0xba   : > { %v395_v33 = vunpack.c.l.bf16 %v385_v26  ;;  %v397_v35 = vunpack.c.h.bf16 %v385_v26  ;;  %v329_v37 = vmax.f32 %v311_v30, 0.0 }
  0xbb   : > { %1151 = vtanh.f32 %v394_v31  ;;  %v351_v45 = vmul.f32 %v1436_v34, %v328_v36 }
  0xbc   : > { %1153 = vtanh.f32 %v396_v32  ;;  %v352_v47 = vmul.f32 %v1441_v38, %v329_v37 }
  0xbd   : > { %1155 = vtanh.f32 %v395_v33  ;;  %v374_v56 = vadd.f32 %v1445_v43, %v351_v45 }
  0xbe   : > { %v283_v39 = vpop.f32.mrf.mxu0  ;;  %1157 = vtanh.f32 %v397_v35  ;;  %v375_v57 = vadd.f32 %v1447_v44, %v352_v47 }
  0xbf   : > { %v312_v40 = vpop.f32.mrf.mxu1  ;;  %v284_v41 = vadd.f32 %v283_v39, %v1427_v27 }
  0xc0   : > { %v313_v42 = vadd.f32 %v312_v40, %v1429_v28 }
  0xc1   : > { %v1152_v46 = vpop.eup %1151  ;;  %v330_v48 = vmax.f32 %v284_v41, 0.0 }
  0xc2   : > { %v331_v49 = vmax.f32 %v313_v42, 0.0  ;;  %v1154_v50 = vpop.eup %1153 }
  0xc3   : > { %v1156_v51 = vpop.eup %1155  ;;  %v353_v52 = vmul.f32 %v1436_v34, %v330_v48  ;;  %v424_v54 = vpack.c.bf16 %v1154_v50, %v1152_v46 }
  0xc4   : > { %v354_v53 = vmul.f32 %v1441_v38, %v331_v49  ;;  %v1158_v55 = vpop.eup %1157 }
  0xc5   : > { %v376_v58 = vadd.f32 %v1445_v43, %v353_v52  ;;  %571 = vmatmul.bf16.gmra.mxu2 %v424_v54  ;;  %v425_v60 = vpack.c.bf16 %v1158_v55, %v1156_v51 }
  0xc6   : > { %v377_v59 = vadd.f32 %v1447_v44, %v354_v53  ;;  %v286_v61 = vpop.f32.mrf.mxu0 }
  0xc7   : > { %v315_v62 = vpop.f32.mrf.mxu1  ;;  %v386_v63 = vpack.c.bf16 %v376_v58, %v374_v56  ;;  %600 = vmatmul.bf16.gmra.mxu3 %v425_v60  ;;  %v287_v1 = vadd.f32 %v286_v61, %v1427_v27 }
  0xc8   : > { %v387_v0 = vpack.c.bf16 %v377_v59, %v375_v57  ;;  %v316_v2 = vadd.f32 %v315_v62, %v1429_v28 }
  0xc9   : > { %v398_v3 = vunpack.c.l.bf16 %v386_v63  ;;  %v400_v4 = vunpack.c.h.bf16 %v386_v63  ;;  %v332_v7 = vmax.f32 %v287_v1, 0.0 }
  0xca   : > { %v399_v5 = vunpack.c.l.bf16 %v387_v0  ;;  %v401_v6 = vunpack.c.h.bf16 %v387_v0  ;;  %v333_v8 = vmax.f32 %v316_v2, 0.0 }
  0xcb   : > { %1159 = vtanh.f32 %v398_v3  ;;  %v355_v13 = vmul.f32 %v1436_v34, %v332_v7 }
  0xcc   : > { %1161 = vtanh.f32 %v400_v4  ;;  %v356_v15 = vmul.f32 %v1441_v38, %v333_v8 }
  0xcd   : > { %1163 = vtanh.f32 %v399_v5  ;;  %v378_v24 = vadd.f32 %v1445_v43, %v355_v13  ;;  %v203_v5 = vld [vmem:[%s1362_s13] sm:$0xff]  }
  0xce   : > { %v288_v9 = vpop.f32.mrf.mxu0  ;;  %1165 = vtanh.f32 %v401_v6 }
  0xcf   : > { %v317_v10 = vpop.f32.mrf.mxu1  ;;  %v289_v11 = vadd.f32 %v288_v9, %v1427_v27  ;;  %v379_v27 = vadd.f32 %v1447_v44, %v356_v15 }
  0xd0   : > { %v318_v12 = vadd.f32 %v317_v10, %v1429_v28  ;;  %v712_v10 = vunpack.c.l.bf16 %v203_v5 }
  0xd1   : > { %v1160_v14 = vpop.eup %1159  ;;  %v334_v16 = vmax.f32 %v289_v11, 0.0  ;;  %v713_v11 = vunpack.c.h.bf16 %v203_v5 }
  0xd2   : > { %v335_v17 = vmax.f32 %v318_v12, 0.0  ;;  %v1162_v18 = vpop.eup %1161 }
  0xd3   : > { %v1164_v19 = vpop.eup %1163  ;;  %v357_v20 = vmul.f32 %v1436_v34, %v334_v16  ;;  %v426_v22 = vpack.c.bf16 %v1162_v18, %v1160_v14 }
  0xd4   : > { %v358_v21 = vmul.f32 %v1441_v38, %v335_v17  ;;  %v1166_v23 = vpop.eup %1165 }
  0xd5   : > { %v380_v28 = vadd.f32 %v1445_v43, %v357_v20  ;;  %576 = vmatmul.bf16.gmra.mxu2 %v426_v22  ;;  %v427_v26 = vpack.c.bf16 %v1166_v23, %v1164_v19 }
  0xd6   : > { %v381_v25 = vadd.f32 %v1447_v44, %v358_v21 }
  0xd7   : > { %v388_v29 = vpack.c.bf16 %v380_v28, %v378_v24  ;;  %605 = vmatmul.bf16.gmra.mxu3 %v427_v26 }
  0xd8   : > { %v389_v30 = vpack.c.bf16 %v381_v25, %v379_v27 }
  0xd9   : > { %v402_v31 = vunpack.c.l.bf16 %v388_v29  ;;  %v404_v32 = vunpack.c.h.bf16 %v388_v29 }
  0xda   : > { %v403_v34 = vunpack.c.l.bf16 %v389_v30  ;;  %v405_v33 = vunpack.c.h.bf16 %v389_v30 }
  0xdb   : > { %1167 = vtanh.f32 %v402_v31 }
  0xdc   : > { %1169 = vtanh.f32 %v404_v32 }
  0xdd   : > { %1171 = vtanh.f32 %v403_v34 }
  0xde   : > { %1173 = vtanh.f32 %v405_v33 }
  0xe1   : > { %v1168_v38 = vpop.eup %1167 }
  0xe2   : > { %v1170_v35 = vpop.eup %1169 }
  0xe3   : > { %v1172_v36 = vpop.eup %1171  ;;  %v428_v37 = vpack.c.bf16 %v1170_v35, %v1168_v38 }
  0xe4   : > { %v1174_v43 = vpop.eup %1173 }
  0xe5   : > { %581 = vmatmul.bf16.gmra.mxu2 %v428_v37  ;;  %v429_v44 = vpack.c.bf16 %v1174_v43, %v1172_v36 }
  0xe7   : > { %610 = vmatmul.bf16.gmra.mxu3 %v429_v44 }
 0x138   : > { %v567_v39 = vpop.f32.mrf.mxu2 }
 0x13a   : > { %v596_v40 = vpop.f32.mrf.mxu3 }
 0x13b   : > { %v597_v42 = vadd.f32 %v596_v40, %v567_v39 }
 0x13d   : > { %v616_v47 = vsel %vm249_vm0, %v597_v42, -inf }
 0x140   : > { %v569_v41 = vpop.f32.mrf.mxu2 }
 0x142   : > { %v598_v45 = vpop.f32.mrf.mxu3 }
 0x143   : > { %v599_v46 = vadd.f32 %v598_v45, %v569_v41 }
 0x145   : > { %v617_v48 = vsel %vm249_vm0, %v599_v46, -inf }
 0x146   : > { %v618_v49 = vmax.f32 %v616_v47, %v617_v48 }
 0x148   : > { %v619_v50 = vrot.slane %v618_v49, 4  ;;  %v572_v51 = vpop.f32.mrf.mxu2 }
 0x14a   : > { %v620_v52 = vmax.f32 %v618_v49, %v619_v50  ;;  %v601_v53 = vpop.f32.mrf.mxu3 }
 0x14b   : > { %v602_v58 = vadd.f32 %v601_v53, %v572_v51  ;;  %v205_v53 = vld [vmem:[%s1362_s13 + $0x8] sm:$0xff]  }
 0x14c   : > { %v621_v54 = vrot.slane %v620_v52, 2 }
 0x14d   : > { %v625_v0 = vsel %vm249_vm0, %v602_v58, -inf }
 0x14e   : > { %v622_v55 = vmax.f32 %v620_v52, %v621_v54 }
 0x150   : > { %v623_v56 = vrot.slane %v622_v55, 1  ;;  %v574_v57 = vpop.f32.mrf.mxu2 }
 0x152   : > { %v624_v59 = vmax.f32 %v622_v55, %v623_v56  ;;  %v603_v60 = vpop.f32.mrf.mxu3 }
 0x153   : > { %v604_v61 = vadd.f32 %v603_v60, %v574_v57  ;;  %v715_v60 = vunpack.c.h.bf16 %v205_v53 }
 0x154   : > { %v652_v62 = vsub.f32 %v597_v42, %v624_v59  ;;  %v653_v63 = vsub.f32 %v599_v46, %v624_v59  ;;  %v714_v59 = vunpack.c.l.bf16 %v205_v53 }
 0x155   : > { %v626_v1 = vsel %vm249_vm0, %v604_v61, -inf }
 0x156   : > { %v660_v2 = vmul.f32 1.442695, %v652_v62  ;;  %v662_v3 = vmul.f32 1.442695, %v653_v63  ;;  %v627_v4 = vmax.f32 %v625_v0, %v626_v1 }
 0x158   : > { %1175 = vpow2.f32 %v660_v2  ;;  %v628_v6 = vrot.slane %v627_v4, 4  ;;  %v577_v7 = vpop.f32.mrf.mxu2 }
 0x159   : > { %1177 = vpow2.f32 %v662_v3 }
 0x15a   : > { %v629_v8 = vmax.f32 %v627_v4, %v628_v6  ;;  %v606_v9 = vpop.f32.mrf.mxu3 }
 0x15b   : > { %v1500_v21 = vadd.f32 %v606_v9, %v577_v7 }
 0x15c   : > { %v630_v12 = vrot.slane %v629_v8, 2 }
 0x15d   : > { %v634_v36 = vsel %vm249_vm0, %v1500_v21, -inf }
 0x15e   : > { %v1176_v13 = vpop.eup %1175  ;;  %v631_v14 = vmax.f32 %v629_v8, %v630_v12 }
 0x15f   : > { %v1178_v15 = vpop.eup %1177  ;;  %v676_v16 = vsel %vm249_vm0, %v1176_v13, 0.0  ;;  %v720_v17 = vmul.f32 %v1176_v13, %v712_v10 }
 0x160   : > { %v677_v18 = vsel %vm249_vm0, %v1178_v15, 0.0  ;;  %v721_v19 = vmul.f32 %v1178_v15, %v713_v11  ;;  %v632_v20 = vrot.slane %v631_v14, 1  ;;  %v579_v22 = vpop.f32.mrf.mxu2 }
 0x161   : > { %v678_v23 = vadd.f32 %v677_v18, %v676_v16  ;;  %v728_v24 = vsel %vm249_vm0, %v720_v17, 0.0  ;;  %v764_v27 = vmul.f32 %v720_v17, %v712_v10 }
 0x162   : > { %v729_v28 = vsel %vm249_vm0, %v721_v19, 0.0  ;;  %v765_v25 = vmul.f32 %v721_v19, %v713_v11  ;;  %v633_v26 = vmax.f32 %v631_v14, %v632_v20  ;;  %v608_v29 = vpop.f32.mrf.mxu3 }
 0x163   : > { %v679_v30 = vrot.slane %v678_v23, 4  ;;  %v730_v31 = vadd.f32 %v729_v28, %v728_v24  ;;  %v772_v32 = vsel %vm249_vm0, %v764_v27, 0.0  ;;  %v1505_v34 = vadd.f32 %v608_v29, %v579_v22 }
 0x164   : > { %v773_v33 = vsel %vm249_vm0, %v765_v25, 0.0  ;;  %v654_v38 = vsub.f32 %v602_v58, %v633_v26  ;;  %v655_v35 = vsub.f32 %v604_v61, %v633_v26 }
 0x165   : > { %v680_v37 = vadd.f32 %v679_v30, %v678_v23  ;;  %v731_v43 = vrot.slane %v730_v31, 4  ;;  %v774_v44 = vadd.f32 %v773_v33, %v772_v32  ;;  %v635_v39 = vsel %vm249_vm0, %v1505_v34, -inf }
 0x166   : > { %v664_v40 = vmul.f32 1.442695, %v654_v38  ;;  %v666_v41 = vmul.f32 1.442695, %v655_v35  ;;  %v636_v42 = vmax.f32 %v634_v36, %v635_v39 }
 0x167   : > { %v681_v45 = vrot.slane %v680_v37, 2  ;;  %v732_v46 = vadd.f32 %v731_v43, %v730_v31  ;;  %v775_v47 = vrot.slane %v774_v44, 4 }
 0x168   : > { %1179 = vpow2.f32 %v664_v40  ;;  %v637_v48 = vrot.slane %v636_v42, 4  ;;  %v582_v49 = vpop.f32.mrf.mxu2 }
 0x169   : > { %v682_v50 = vadd.f32 %v681_v45, %v680_v37  ;;  %v733_v51 = vrot.slane %v732_v46, 2  ;;  %v776_v52 = vadd.f32 %v775_v47, %v774_v44  ;;  %1181 = vpow2.f32 %v666_v41 }
 0x16a   : > { %v638_v54 = vmax.f32 %v636_v42, %v637_v48  ;;  %v611_v55 = vpop.f32.mrf.mxu3 }
 0x16b   : > { %v683_v56 = vrot.slane %v682_v50, 1  ;;  %v734_v57 = vadd.f32 %v733_v51, %v732_v46  ;;  %v777_v58 = vrot.slane %v776_v52, 2  ;;  %v1515_v5 = vadd.f32 %v611_v55, %v582_v49 }
 0x16c   : > { %v639_v61 = vrot.slane %v638_v54, 2 }
 0x16d   : > { %v684_v62 = vadd.f32 %v683_v56, %v682_v50  ;;  %v778_v63 = vadd.f32 %v777_v58, %v776_v52  ;;  %v735_v3 = vrot.slane %v734_v57, 1  ;;  %v643_v28 = vsel %vm249_vm0, %v1515_v5, -inf }
 0x16e   : > { %v1180_v0 = vpop.eup %1179  ;;  %v640_v1 = vmax.f32 %v638_v54, %v639_v61 }
 0x16f   : > { %v1182_v2 = vpop.eup %1181  ;;  %1183 = vrcp.f32 %v684_v62  ;;  %v685_v4 = vsel %vm249_vm0, %v1180_v0, 0.0  ;;  %v722_v7 = vmul.f32 %v1180_v0, %v714_v59  ;;  %v779_v11 = vrot.slane %v778_v63, 1 }
 0x170   : > { %v686_v6 = vsel %vm249_vm0, %v1182_v2, 0.0  ;;  %v723_v8 = vmul.f32 %v1182_v2, %v715_v60  ;;  %v641_v9 = vrot.slane %v640_v1, 1  ;;  %v584_v10 = vpop.f32.mrf.mxu2  ;;  %v736_v23 = vadd.f32 %v735_v3, %v734_v57 }
 0x171   : > { %v687_v12 = vadd.f32 %v686_v6, %v685_v4  ;;  %v737_v13 = vsel %vm249_vm0, %v722_v7, 0.0  ;;  %v766_v15 = vmul.f32 %v722_v7, %v714_v59  ;;  %v780_v32 = vadd.f32 %v779_v11, %v778_v63 }
 0x172   : > { %v738_v14 = vsel %vm249_vm0, %v723_v8, 0.0  ;;  %v767_v16 = vmul.f32 %v723_v8, %v715_v60  ;;  %v613_v17 = vpop.f32.mrf.mxu3  ;;  %v642_v20 = vmax.f32 %v640_v1, %v641_v9 }
 0x173   : > { %v688_v18 = vrot.slane %v687_v12, 4  ;;  %v739_v19 = vadd.f32 %v738_v14, %v737_v13  ;;  %v1522_v22 = vadd.f32 %v613_v17, %v584_v10  ;;  %v781_v24 = vsel %vm249_vm0, %v766_v15, 0.0 }
 0x174   : > { %v782_v27 = vsel %vm249_vm0, %v767_v16, 0.0  ;;  %v656_v31 = vsub.f32 %v1500_v21, %v642_v20  ;;  %v657_v38 = vsub.f32 %v1505_v34, %v642_v20  ;;  %v207_v34 = vld [vmem:[%s1362_s13 + $0x10] sm:$0xff]  }
 0x175   : > { %v1184_v25 = vpop.eup %1183  ;;  %v689_v26 = vadd.f32 %v688_v18, %v687_v12  ;;  %v740_v29 = vrot.slane %v739_v19, 4  ;;  %v783_v30 = vadd.f32 %v782_v27, %v781_v24  ;;  %v644_v35 = vsel %vm249_vm0, %v1522_v22, -inf }
 0x176   : > { %v812_v33 = vmul.f32 %v1184_v25, %v736_v23  ;;  %v668_v44 = vmul.f32 1.442695, %v656_v31  ;;  %v816_v39 = vmul.f32 %v1184_v25, %v780_v32  ;;  %v670_v21 = vmul.f32 1.442695, %v657_v38 }
 0x177   : > { %v690_v36 = vrot.slane %v689_v26, 2  ;;  %v741_v37 = vadd.f32 %v740_v29, %v739_v19  ;;  %v784_v43 = vrot.slane %v783_v30, 4  ;;  %v645_v41 = vmax.f32 %v643_v28, %v644_v35 }
 0x178   : > { %v820_v40 = vmul.f32 %v812_v33, %v812_v33  ;;  %881 = vst.msk [vmem:[%s1532_s5] sm:$0x1] %vm880_vm1, %v812_v33  ;;  %1185 = vpow2.f32 %v668_v44  ;;  %v716_v53 = vunpack.c.l.bf16 %v207_v34  ;;  %v717_v57 = vunpack.c.h.bf16 %v207_v34 }
 0x179   : > { %v691_v42 = vadd.f32 %v690_v36, %v689_v26  ;;  %v742_v45 = vrot.slane %v741_v37, 2  ;;  %v785_v46 = vadd.f32 %v784_v43, %v783_v30  ;;  %1187 = vpow2.f32 %v670_v21 }
 0x17a   : > { %v824_v47 = vsub.f32 %v816_v39, %v820_v40  ;;  %v646_v48 = vrot.slane %v645_v41, 4 }
 0x17b   : > { %v692_v49 = vrot.slane %v691_v42, 1  ;;  %v743_v50 = vadd.f32 %v742_v45, %v741_v37  ;;  %v786_v51 = vrot.slane %v785_v46, 2 }
 0x17c   : > { %v1537_v52 = vmax.f32 %v824_v47, 0.0001  ;;  %v647_v54 = vmax.f32 %v645_v41, %v646_v48  ;;  %v209_v41 = vld [vmem:[%s1362_s13 + $0x18] sm:$0xff]   ;;  %s1101_s13 = sshll.u32 %s1319_s19, 3  ;;  %s890_s19 = scalar_lea.sflag [#allocation3], %s191_s29 }
 0x17d   : > { %v693_v55 = vadd.f32 %v692_v49, %v691_v42  ;;  %v787_v56 = vadd.f32 %v786_v51, %v785_v46  ;;  %v744_v60 = vrot.slane %v743_v50, 1  ;;  %v718_v47 = vunpack.c.l.bf16 %v209_v41  ;;  %s901_s8 = scalar_lea.hbm %s1622_s4, %s1101_s13 }
 0x17e   : > { %1189 = vrsqrt.f32 %v1537_v52  ;;  %v648_v58 = vrot.slane %v647_v54, 2  ;;  %v1186_v59 = vpop.eup %1185  ;;  %vm839_vm2 = vcmp.eq.f32.partialorder %v1537_v52, inf  ;;  %v842_v51 = vand.u32 2147483648, %v1537_v52  ;;  %s904_s10 = sshll.u32 %s901_s8, 4  ;;  %s905_s10 = int_to_ptr.hbm [resolvable:$true] %s904_s10 }
 0x17f   : > { %1191 = vrcp.f32 %v693_v55  ;;  %v1188_v61 = vpop.eup %1187  ;;  %v694_v62 = vsel %vm249_vm0, %v1186_v59, 0.0  ;;  %v724_v63 = vmul.f32 %v1186_v59, %v716_v53  ;;  %v788_v1 = vrot.slane %v787_v56, 1  ;;  %s1221_s11 = sshra.s32 %s905_s10, 4  ;;  %s1222_s11 = int_to_ptr.hbm [resolvable:$true] %s1221_s11 }
 0x180   : > { %v649_v0 = vmax.f32 %v647_v54, %v648_v58  ;;  %v695_v2 = vsel %vm249_vm0, %v1188_v61, 0.0  ;;  %v725_v3 = vmul.f32 %v1188_v61, %v717_v57  ;;  %v745_v9 = vadd.f32 %v744_v60, %v743_v50  ;;  %s1223_s12 = scalar_lea.hbm %s1222_s11, 8  ;;  %p1228_p0 = scmp.lt.s32.totalorder %s1222_s11, %s1622_s4 }
 0x181   : > { %v696_v4 = vadd.f32 %v695_v2, %v694_v62  ;;  %v746_v6 = vsel %vm249_vm0, %v724_v63, 0.0  ;;  %v768_v7 = vmul.f32 %v724_v63, %v716_v53  ;;  %v789_v20 = vadd.f32 %v788_v1, %v787_v56  ;;  %p1224_p11 = scmp.ne.s32.totalorder %s1222_s11, %s1223_s12  ;;  %p1229_p1 = scmp.lt.s32.totalorder %s1227_s22, %s1223_s12 }
 0x182   : > { %v650_v8 = vrot.slane %v649_v0, 1  ;;  %v747_v10 = vsel %vm249_vm0, %v725_v3, 0.0  ;;  %v769_v11 = vmul.f32 %v725_v3, %v717_v57  ;;  %v719_v50 = vunpack.c.h.bf16 %v209_v41 }
 0x183   : > { %v697_v13 = vrot.slane %v696_v4, 4  ;;  %v748_v14 = vadd.f32 %v747_v10, %v746_v6  ;;  %v790_v15 = vsel %vm249_vm0, %v768_v7, 0.0  ;;  %vm841_vm3 = vcmp.eq.f32.partialorder %v1537_v52, 0.0  ;;  %p1225_p12 = pnand %p1224_p11, %p1336_p5  ;;  %p1230_p2 = por %p1229_p1, %p1228_p0 }
 0x184   : > { %v1190_v12 = vpop.eup %1189  ;;  %v651_v16 = vmax.f32 %v649_v0, %v650_v8  ;;  %v791_v19 = vsel %vm249_vm0, %v769_v11, 0.0 }
 0x185   : > { %v1192_v17 = vpop.eup %1191  ;;  %v833_v18 = vmul.f32 %v1190_v12, %v1537_v52  ;;  %v698_v24 = vadd.f32 %v697_v13, %v696_v4  ;;  %v749_v27 = vrot.slane %v748_v14, 4  ;;  %v792_v25 = vadd.f32 %v791_v19, %v790_v15  ;;  %p1226_p13 = pneg %p1225_p12 }
 0x186   : > { %v813_v23 = vmul.f32 %v1192_v17, %v745_v9  ;;  %v658_v26 = vsub.f32 %v1515_v5, %v651_v16  ;;  %v659_v29 = vsub.f32 %v1522_v22, %v651_v16  ;;  %v817_v30 = vmul.f32 %v1192_v17, %v789_v20 }
 0x187   : > { %v834_v28 = vmul.f32 %v1190_v12, %v833_v18  ;;  %v699_v32 = vrot.slane %v698_v24, 2  ;;  %v750_v33 = vadd.f32 %v749_v27, %v748_v14  ;;  %v793_v35 = vrot.slane %v792_v25, 4  ;;  %p1231_p3 = pnand %p1230_p2, %p1226_p13 }
 0x188   : > { %v821_v31 = vmul.f32 %v813_v23, %v813_v23  ;;  %882 = vst.msk [vmem:[%s1532_s5 + $0x2] sm:$0x1] %vm880_vm1, %v813_v23  ;;  %v672_v36 = vmul.f32 1.442695, %v658_v26  ;;  %v674_v37 = vmul.f32 1.442695, %v659_v29 }
 0x189   : > { %v835_v38 = vmul.f32 0.5, %v834_v28  ;;  %v700_v44 = vadd.f32 %v699_v32, %v698_v24  ;;  %v751_v39 = vrot.slane %v750_v33, 2  ;;  %v794_v21 = vadd.f32 %v793_v35, %v792_v25 }
 0x18a   : > { %v825_v43 = vsub.f32 %v817_v30, %v821_v31  ;;  %1193 = vpow2.f32 %v672_v36 }
 0x18b   : > { %v836_v40 = vsub.f32 1.5, %v835_v38  ;;  %v701_v22 = vrot.slane %v700_v44, 1  ;;  %1195 = vpow2.f32 %v674_v37  ;;  %v752_v45 = vadd.f32 %v751_v39, %v750_v33 }
 0x18c   : > { %v1552_v5 = vmax.f32 %v825_v43, 0.0001  ;;  %v795_v46 = vrot.slane %v794_v21, 2 }
 0x18d   : > { %v837_v42 = vmul.f32 %v1190_v12, %v836_v40  ;;  %v702_v34 = vadd.f32 %v701_v22, %v700_v44  ;;  %v753_v54 = vrot.slane %v752_v45, 1 }
 0x18e   : > { %1197 = vrsqrt.f32 %v1552_v5  ;;  %v796_v49 = vadd.f32 %v795_v46, %v794_v21  ;;  %vm851_vm4 = vcmp.eq.f32.partialorder %v1552_v5, inf  ;;  %v854_v43 = vand.u32 2147483648, %v1552_v5 }
 0x18f   : > { %v838_v48 = vmul.f32 %v837_v42, %v1537_v52  ;;  %1199 = vrcp.f32 %v702_v34  ;;  %v754_v4 = vadd.f32 %v753_v54, %v752_v45  ;;  %vm853_vm5 = vcmp.eq.f32.partialorder %v1552_v5, 0.0 }
 0x190   : > { %v1194_v53 = vpop.eup %1193  ;;  %v797_v60 = vrot.slane %v796_v49, 1 }
 0x191   : > { %v840_v55 = vsel %vm839_vm2, %v1537_v52, %v838_v48  ;;  %v1196_v56 = vpop.eup %1195  ;;  %v703_v57 = vsel %vm249_vm0, %v1194_v53, 0.0  ;;  %v726_v58 = vmul.f32 %v1194_v53, %v718_v47 }
 0x192   : > { %v843_v59 = vsel %vm841_vm3, %v842_v51, %v840_v55  ;;  %v704_v61 = vsel %vm249_vm0, %v1196_v56, 0.0  ;;  %v727_v62 = vmul.f32 %v1196_v56, %v719_v50  ;;  %v798_v12 = vadd.f32 %v797_v60, %v796_v49 }
 0x193   : > { %885 = vst.msk [vmem:[%s1532_s5 + $0x1] sm:$0x1] %vm880_vm1, %v843_v59  ;;  %v705_v0 = vadd.f32 %v704_v61, %v703_v57  ;;  %v755_v1 = vsel %vm249_vm0, %v726_v58, 0.0  ;;  %v770_v2 = vmul.f32 %v726_v58, %v718_v47 }
 0x194   : > { %v1198_v63 = vpop.eup %1197  ;;  %v756_v52 = vsel %vm249_vm0, %v727_v62, 0.0  ;;  %v771_v6 = vmul.f32 %v727_v62, %v719_v50 }
 0x195   : > { %v845_v3 = vmul.f32 %v1198_v63, %v1552_v5  ;;  %v1200_v7 = vpop.eup %1199  ;;  %v706_v8 = vrot.slane %v705_v0, 4  ;;  %v757_v9 = vadd.f32 %v756_v52, %v755_v1  ;;  %v799_v10 = vsel %vm249_vm0, %v770_v2, 0.0 }
 0x196   : > { %v814_v13 = vmul.f32 %v1200_v7, %v754_v4  ;;  %v800_v14 = vsel %vm249_vm0, %v771_v6, 0.0  ;;  %v818_v19 = vmul.f32 %v1200_v7, %v798_v12 }
 0x197   : > { %v846_v11 = vmul.f32 %v1198_v63, %v845_v3  ;;  %v707_v15 = vadd.f32 %v706_v8, %v705_v0  ;;  %v758_v16 = vrot.slane %v757_v9, 4  ;;  %v801_v17 = vadd.f32 %v800_v14, %v799_v10 }
 0x198   : > { %v822_v20 = vmul.f32 %v814_v13, %v814_v13  ;;  %883 = vst.msk [vmem:[%s1532_s5 + $0x4] sm:$0x1] %vm880_vm1, %v814_v13 }
 0x199   : > { %v847_v18 = vmul.f32 0.5, %v846_v11  ;;  %v708_v23 = vrot.slane %v707_v15, 2  ;;  %v759_v24 = vadd.f32 %v758_v16, %v757_v9  ;;  %v802_v27 = vrot.slane %v801_v17, 4 }
 0x19a   : > { %v826_v25 = vsub.f32 %v818_v19, %v822_v20 }
 0x19b   : > { %v848_v28 = vsub.f32 1.5, %v847_v18  ;;  %v709_v26 = vadd.f32 %v708_v23, %v707_v15  ;;  %v760_v29 = vrot.slane %v759_v24, 2  ;;  %v803_v30 = vadd.f32 %v802_v27, %v801_v17 }
 0x19c   : > { %v830_v32 = vmax.f32 %v826_v25, 0.0001 }
 0x19d   : > { %v849_v31 = vmul.f32 %v1198_v63, %v848_v28  ;;  %v710_v33 = vrot.slane %v709_v26, 1  ;;  %v804_v38 = vrot.slane %v803_v30, 2  ;;  %v761_v36 = vadd.f32 %v760_v29, %v759_v24 }
 0x19e   : > { %1201 = vrsqrt.f32 %v830_v32  ;;  %vm863_vm6 = vcmp.eq.f32.partialorder %v830_v32, inf  ;;  %v866_v57 = vand.u32 2147483648, %v830_v32  ;;  %vm865_vm7 = vcmp.eq.f32.partialorder %v830_v32, 0.0 }
 0x19f   : > { %v850_v35 = vmul.f32 %v849_v31, %v1552_v5  ;;  %v711_v37 = vadd.f32 %v710_v33, %v709_v26  ;;  %v805_v44 = vadd.f32 %v804_v38, %v803_v30  ;;  %v762_v21 = vrot.slane %v761_v36, 1 }
 0x1a1   : > { %v852_v39 = vsel %vm851_vm4, %v1552_v5, %v850_v35  ;;  %1203 = vrcp.f32 %v711_v37  ;;  %v806_v22 = vrot.slane %v805_v44, 1  ;;  %v763_v45 = vadd.f32 %v762_v21, %v761_v36 }
 0x1a2   : > { %v855_v40 = vsel %vm853_vm5, %v854_v43, %v852_v39 }
 0x1a3   : > { %886 = vst.msk [vmem:[%s1532_s5 + $0x3] sm:$0x1] %vm880_vm1, %v855_v40  ;;  %v807_v47 = vadd.f32 %v806_v22, %v805_v44 }
 0x1a4   : > { %v1202_v41 = vpop.eup %1201 }
 0x1a5   : > { %v857_v42 = vmul.f32 %v1202_v41, %v830_v32 }
 0x1a7   : > { %v1204_v46 = vpop.eup %1203  ;;  %v858_v34 = vmul.f32 %v1202_v41, %v857_v42 }
 0x1a8   : > { %v815_v48 = vmul.f32 %v1204_v46, %v763_v45  ;;  %v819_v50 = vmul.f32 %v1204_v46, %v807_v47 }
 0x1a9   : > { %v859_v49 = vmul.f32 0.5, %v858_v34 }
 0x1aa   : > { %v823_v51 = vmul.f32 %v815_v48, %v815_v48  ;;  %884 = vst.msk [vmem:[%s1532_s5 + $0x6] sm:$0x1] %vm880_vm1, %v815_v48 }
 0x1ab   : > { %v860_v5 = vsub.f32 1.5, %v859_v49 }
 0x1ac   : > { %v827_v53 = vsub.f32 %v819_v50, %v823_v51 }
 0x1ad   : > { %v861_v54 = vmul.f32 %v1202_v41, %v860_v5 }
 0x1ae   : > { %v831_v55 = vmax.f32 %v827_v53, 0.0001 }
 0x1af   : > { %v862_v56 = vmul.f32 %v861_v54, %v830_v32 }
 0x1b0   : > { %1205 = vrsqrt.f32 %v831_v55  ;;  %vm875_vm8 = vcmp.eq.f32.partialorder %v831_v55, inf  ;;  %v878_v3 = vand.u32 2147483648, %v831_v55  ;;  %vm877_vm9 = vcmp.eq.f32.partialorder %v831_v55, 0.0 }
 0x1b1   : > { %v864_v58 = vsel %vm863_vm6, %v830_v32, %v862_v56 }
 0x1b2   : > { %v867_v59 = vsel %vm865_vm7, %v866_v57, %v864_v58 }
 0x1b3   : > { %887 = vst.msk [vmem:[%s1532_s5 + $0x5] sm:$0x1] %vm880_vm1, %v867_v59 }
 0x1b6   : > { %v1206_v60 = vpop.eup %1205 }
 0x1b7   : > { %v869_v61 = vmul.f32 %v1206_v60, %v831_v55 }
 0x1b9   : > { %v870_v62 = vmul.f32 %v1206_v60, %v869_v61 }
 0x1bb   : > { %v871_v63 = vmul.f32 0.5, %v870_v62 }
 0x1bd   : > { %v872_v0 = vsub.f32 1.5, %v871_v63 }
 0x1bf   : > { %v873_v1 = vmul.f32 %v1206_v60, %v872_v0 }
 0x1c1   : > { %v874_v2 = vmul.f32 %v873_v1, %v831_v55 }
 0x1c3   : > { %v876_v4 = vsel %vm875_vm8, %v831_v55, %v874_v2 }
 0x1c4   : > { %v879_v52 = vsel %vm877_vm9, %v878_v3, %v876_v4 }
 0x1c5   : > { %888 = vst.msk [vmem:[%s1532_s5 + $0x7] sm:$0x1] %vm880_vm1, %v879_v52 }
 0x1c6   : > { %1234 = shalt.err (!%p1231_p3)
}
 0x1c7   : > { %s1271_s28 = smov 32   ;;  %s1272_s29 = smov 2  }
 0x1c8   : > { %1102 = dma.vmem_to_hbm [thread:$0]  (%p1336_p5), %s903_s9, 128, %s905_s10, %s890_s19, %s1271_s28, %s1271_s28, %s1272_s29  }
 0x1c9 PF: > { %p1108_p4 = scmp.ge.s32.totalorder %s1269_s18, 2  ;;  %s919_s30 = sand.u32 1, %s1257_s15  }
 0x1ca   : > { %s920_s5 = scalar_lea.sflag [#allocation3], %s919_s30 }
 0x1cb   : > { %p1105_p7 = pnand %p1108_p4, %p1340_p6 }
 0x1cd   : > { %p1106_p8 = pneg %p1105_p7 }
 0x1cf   : > { %1252 = dma.done.wait (%p1106_p8), %s920_s5, 128  }
 0x1d0   : > { %1254 = vsyncadd (%p1106_p8), %s920_s5, 4294967168  ;;  %p14_p9 = scmp.ge.s32.totalorder %s1323_s21, 4   ;;  %s1625_s15 = smov %s1261_s16 }
 0x1d1   : > { %s1626_s16 = smov %s1265_s17  ;;  %s1627_s17 = smov %s1334_s24 }
 0x1d2   : > { %s1628_s18 = smov %s1323_s21  ;;  %16 = sbr.rel (!%p14_p9) target bundleno = 3 (0x3), region = 73 }
 0x1d7   :  { %926 = vsyncpa [#allocation3], 1 }
 0x1d8   :  { %928 = vsyncpa [#allocation3 + $0x1], 1 }

</bundles_post_ra>
